<compile_context>
chip_gen: v7x
topology: tpu7x:2x2x1
jax: 0.10.0
libtpu: 0.0.40
codegen_flags: <defaults>
</compile_context>

<pallas_src>
import functools

import jax
import jax.numpy as jnp
from jax import lax
from jax.experimental import pallas as pl
from jax.experimental.pallas import tpu as pltpu

_LANE = 128
_NEG_INF = -1e30


def _round_up(x, m):
    return ((x + m - 1) // m) * m


def _pick_tm(n_rows):
    """Row-tile size: 512 rows when the input is big (>=2 parallel tiles for
    v7x's two TensorCores); otherwise ~half the rows rounded to a sublane
    multiple so small inputs still work."""
    if n_rows >= 1024:
        return 512
    half = _round_up(max(n_rows // 2, 1), 8)
    return min(half, _round_up(n_rows, 8))


# ---------------------------------------------------------------------------
# Kernel bodies
# ---------------------------------------------------------------------------
def _compute_logits(ids, w):
    # ids: (tm, 1) int32, w: (Vp, Vp) float.  One-hot @ W on the MXU.
    tm = ids.shape[0]
    vp = w.shape[1]
    col = lax.broadcasted_iota(jnp.int32, (tm, vp), 1)          # (tm, Vp)
    one_hot = (ids == col).astype(w.dtype)                      # (tm, Vp)
    logits = jnp.dot(one_hot, w, preferred_element_type=jnp.float32)
    return logits, col                                          # f32 (tm, Vp)


def _nll_partial(ids, tgt, w, v, n_valid):
    """Per-block cross-entropy partial sum (masked for padded cols/rows)."""
    tm = ids.shape[0]
    logits, col = _compute_logits(ids, w)
    valid_col = col < v
    masked = jnp.where(valid_col, logits, _NEG_INF)
    m = jnp.max(masked, axis=-1, keepdims=True)                 # (tm, 1)
    lse = m + jnp.log(jnp.sum(jnp.exp(masked - m), axis=-1, keepdims=True))
    tgt_logit = jnp.sum(jnp.where(tgt == col, logits, 0.0),
                        axis=-1, keepdims=True)                 # (tm, 1)
    nll = lse - tgt_logit                                       # (tm, 1)
    row = pl.program_id(0) * tm + lax.broadcasted_iota(jnp.int32, (tm, 1), 0)
    nll = jnp.where(row < n_valid, nll, 0.0)                    # mask pad rows
    return logits, jnp.sum(nll, axis=0, keepdims=True)          # (1, 1)


def _logits_kernel(idx_ref, w_ref, logits_ref):
    logits, _ = _compute_logits(idx_ref[...], w_ref[...])
    logits_ref[...] = logits.astype(logits_ref.dtype)


def _logits_loss_kernel(idx_ref, tgt_ref, w_ref, logits_ref, nll_ref, *,
                        v, n_valid):
    logits, partial = _nll_partial(idx_ref[...], tgt_ref[...], w_ref[...],
                                   v, n_valid)
    logits_ref[...] = logits.astype(logits_ref.dtype)
    nll_ref[...] = partial.reshape(1, 1, 1)


def _loss_only_kernel(idx_ref, tgt_ref, w_ref, nll_ref, *, v, n_valid):
    _, partial = _nll_partial(idx_ref[...], tgt_ref[...], w_ref[...],
                              v, n_valid)
    nll_ref[...] = partial.reshape(1, 1, 1)


# ---------------------------------------------------------------------------
# Wrappers
# ---------------------------------------------------------------------------
def _prep(idx, W, targets):
    B, T = idx.shape
    v = W.shape[0]
    n = B * T
    tm = _pick_tm(n)
    n_pad = _round_up(n, tm)
    g = n_pad // tm
    vp = _round_up(v, _LANE)

    Wp = jnp.pad(W, ((0, vp - v), (0, vp - v))) if vp != v else W
    idx_flat = idx.astype(jnp.int32).reshape(n, 1)
    if n_pad != n:
        idx_flat = jnp.pad(idx_flat, ((0, n_pad - n), (0, 0)))
    tgt_flat = None
    if targets is not None:
        tgt_flat = targets.astype(jnp.int32).reshape(n, 1)
        if n_pad != n:
            tgt_flat = jnp.pad(tgt_flat, ((0, n_pad - n), (0, 0)))

    specs = dict(
        w_spec=pl.BlockSpec((vp, vp), lambda i: (0, 0)),        # VMEM-resident
        idx_spec=pl.BlockSpec((tm, 1), lambda i: (i, 0)),
        logits_spec=pl.BlockSpec((tm, vp), lambda i: (i, 0)),
        nll_spec=pl.BlockSpec((1, 1, 1), lambda i: (i, 0, 0)),
    )
    meta = dict(B=B, T=T, v=v, vp=vp, n=n, n_pad=n_pad, tm=tm, g=g)
    return Wp, idx_flat, tgt_flat, specs, meta


_CPARAMS = pltpu.CompilerParams(dimension_semantics=("parallel",))


def bigram_forward(idx, W, targets=None):
    """idx: (B, T) int, W: (V, V) float.  Returns (logits (B,T,V), loss|None)."""
    Wp, idx_flat, tgt_flat, s, m = _prep(idx, W, targets)

    if targets is None:
        logits_pad = pl.pallas_call(
            _logits_kernel,
            out_shape=jax.ShapeDtypeStruct((m["n_pad"], m["vp"]), W.dtype),
            grid_spec=pltpu.PrefetchScalarGridSpec(
                num_scalar_prefetch=0, grid=(m["g"],),
                in_specs=[s["idx_spec"], s["w_spec"]],
                out_specs=s["logits_spec"]),
            compiler_params=_CPARAMS,
        )(idx_flat, Wp)
        logits = logits_pad[:m["n"], :m["v"]].reshape(m["B"], m["T"], m["v"])
        return logits, None

    logits_pad, nll = pl.pallas_call(
        functools.partial(_logits_loss_kernel, v=m["v"], n_valid=m["n"]),
        out_shape=(
            jax.ShapeDtypeStruct((m["n_pad"], m["vp"]), W.dtype),
            jax.ShapeDtypeStruct((m["g"], 1, 1), jnp.float32),
        ),
        grid_spec=pltpu.PrefetchScalarGridSpec(
            num_scalar_prefetch=0, grid=(m["g"],),
            in_specs=[s["idx_spec"], s["idx_spec"], s["w_spec"]],
            out_specs=(s["logits_spec"], s["nll_spec"])),
        compiler_params=_CPARAMS,
    )(idx_flat, tgt_flat, Wp)
    logits = logits_pad[:m["n"], :m["v"]].reshape(m["B"], m["T"], m["v"])
    loss = jnp.sum(nll) / m["n"]
    return logits, loss


def bigram_loss(idx, W, targets):
    """Loss-only path: no logits writeback to HBM (training-step friendly)."""
    Wp, idx_flat, tgt_flat, s, m = _prep(idx, W, targets)
    nll = pl.pallas_call(
        functools.partial(_loss_only_kernel, v=m["v"], n_valid=m["n"]),
        out_shape=jax.ShapeDtypeStruct((m["g"], 1, 1), jnp.float32),
        grid_spec=pltpu.PrefetchScalarGridSpec(
            num_scalar_prefetch=0, grid=(m["g"],),
            in_specs=[s["idx_spec"], s["idx_spec"], s["w_spec"]],
            out_specs=s["nll_spec"]),
        compiler_params=_CPARAMS,
    )(idx_flat, tgt_flat, Wp)
    return jnp.sum(nll) / m["n"]


# ---------------------------------------------------------------------------
# Demo / self-check
# ---------------------------------------------------------------------------
if __name__ == "__main__":
    vocab_size = 65
    B, T = 2, 1024                        # module: idx = randint(..., (2, block_size))

    key = jax.random.PRNGKey(0)
    k_w, k_idx, k_tgt = jax.random.split(key, 3)
    W = jax.random.normal(k_w, (vocab_size, vocab_size), jnp.float32)
    idx = jax.random.randint(k_idx, (B, T), 0, vocab_size, jnp.int32)
    targets = jax.random.randint(k_tgt, (B, T), 0, vocab_size, jnp.int32)

    # targets=None path (logits only)
    logits_only, loss_none = bigram_forward(idx, W, targets=None)
    logits_only = jax.block_until_ready(logits_only)
    assert loss_none is None
    assert logits_only.shape == (B, T, vocab_size)

    # targets path (logits + loss)
    logits, loss = bigram_forward(idx, W, targets)
    logits = jax.block_until_ready(logits)
    loss = jax.block_until_ready(loss)
    assert logits.shape == (B, T, vocab_size)
    assert jnp.isfinite(loss)

    # loss-only path (no logits writeback)
    loss_only = jax.block_until_ready(bigram_loss(idx, W, targets))

    # reference check against plain-JAX embedding lookup + cross entropy
    ref_logits = jnp.take(W, idx, axis=0)
    ref_lse = jax.scipy.special.logsumexp(ref_logits, axis=-1)
    ref_tgt = jnp.take_along_axis(ref_logits, targets[..., None], axis=-1)[..., 0]
    ref_loss = jnp.mean(ref_lse - ref_tgt)
    assert jnp.allclose(logits, ref_logits, atol=1e-5, rtol=1e-5)
    assert jnp.allclose(logits_only, ref_logits, atol=1e-5, rtol=1e-5)
    assert jnp.allclose(loss, ref_loss, atol=1e-5, rtol=1e-5)
    assert jnp.allclose(loss_only, ref_loss, atol=1e-5, rtol=1e-5)

    print("KERNEL_OK")
</pallas_src>

<mosaic_0001>
module attributes {stable_mosaic.version = 11 : i64} {
  func.func @_logits_kernel(%arg0: i32, %arg1: memref<512x1xi32, #tpu.memory_space<vmem>>, %arg2: memref<128x128xf32, #tpu.memory_space<vmem>>, %arg3: memref<512x128xf32, #tpu.memory_space<vmem>>) attributes {dimension_semantics = [#tpu.dimension_semantics<parallel>], iteration_bounds = array<i64: 4>, scalar_prefetch = 0 : i64, scratch_operands = 0 : i64, tpu.core_type = #tpu.core_type<tc>, window_params = [{transform_indices = @transform_0, window_bounds = array<i64: 512, 1>}, {pipeline_mode = #tpu.pipeline_mode<synchronous>, transform_indices = @transform_1, window_bounds = array<i64: 128, 128>}, {transform_indices = @transform_2, window_bounds = array<i64: 512, 128>}]} {
    %c0 = arith.constant 0 : index
    %c0_0 = arith.constant 0 : index
    %0 = vector.load %arg1[%c0, %c0_0] : memref<512x1xi32, #tpu.memory_space<vmem>>, vector<512x1xi32>
    %c0_1 = arith.constant 0 : index
    %c0_2 = arith.constant 0 : index
    %1 = vector.load %arg2[%c0_1, %c0_2] : memref<128x128xf32, #tpu.memory_space<vmem>>, vector<128x128xf32>
    %2 = tpu.iota {dimensions = array<i32: 1>} : vector<512x128xi32>
    %3 = vector.broadcast %0 : vector<512x1xi32> to vector<512x128xi32>
    %4 = arith.cmpi eq, %3, %2 : vector<512x128xi32>
    %5 = arith.extui %4 : vector<512x128xi1> to vector<512x128xi32>
    %6 = arith.sitofp %5 : vector<512x128xi32> to vector<512x128xf32>
    %cst = arith.constant dense<0.000000e+00> : vector<512x128xf32>
    %7 = tpu.matmul %6, %1, %cst {dimension_numbers = #tpu.dot_dimension_numbers<[1], [0], [0], [1], [0, 0, 1, 1], [], []>} : vector<512x128xf32>, vector<128x128xf32>, vector<512x128xf32> -> vector<512x128xf32>
    %c0_3 = arith.constant 0 : index
    %c0_4 = arith.constant 0 : index
    %8 = vector.load %arg3[%c0_3, %c0_4] : memref<512x128xf32, #tpu.memory_space<vmem>>, vector<512x128xf32>
    tpu.vector_store %arg3[%c0_3, %c0_4], %7 {strides = array<i32>} : memref<512x128xf32, #tpu.memory_space<vmem>>, vector<512x128xf32>,
    return
  }
  func.func @transform_0(%arg0: i32) -> (i32, i32) {
    %c0_i32 = arith.constant 0 : i32
    %c0_i32_0 = arith.constant 0 : i32
    return %arg0, %c0_i32 : i32, i32
  }
  func.func @transform_1(%arg0: i32) -> (i32, i32) {
    %c0_i32 = arith.constant 0 : i32
    %c0_i32_0 = arith.constant 0 : i32
    %c0_i32_1 = arith.constant 0 : i32
    return %c0_i32, %c0_i32_0 : i32, i32
  }
  func.func @transform_2(%arg0: i32) -> (i32, i32) {
    %c0_i32 = arith.constant 0 : i32
    %c0_i32_0 = arith.constant 0 : i32
    return %arg0, %c0_i32 : i32, i32
  }
}

</mosaic_0001>

<bundles_post_ra>
// kernel: tpu_custom_call.1
= control target key start
LH: loop header
LB: loop body
LE: loop exit
PB: predicated region body
PF: predicated region fallthrough
CT: control target
= control target key end

     0   :  { %7 = vsyncpa [#allocation3], 0  ;;  %s2079_s0 = inlined_call_operand.vmem [shape: s32[2048,1], index: 0, kind: input, shape index: {}]   ;;  %s2080_s1 = inlined_call_operand.vmem [shape: f32[128,128], index: 1, kind: input, shape index: {}]   ;;  %s2081_s2 = inlined_call_operand.hbm [shape: f32[2048,128], index: 2, kind: output, shape index: {}]  }
   0x1   :  { %9 = vsyncpa [#allocation3 + $0x1], 0  ;;  %s1662_s9 = smov 0   ;;  %s1664_s10 = smov 0  }
   0x2   :  { %s1666_s11 = smov 0   ;;  %s1668_s12 = smov 0  }
   0x3 LB: > { %s1683_s13 = sadd.s32 4294967295, %s1640_s12   ;;  %s1136_s14 = sadd.s32 4294967294, %s1640_s12   ;;  %s1640_s12 = sphi %s1668_s12, %s2087_s12   ;;  %s1636_s11 = sphi %s1666_s11, %s2086_s11   ;;  %s1632_s10 = sphi %s1664_s10, %s2085_s10   ;;  %s1628_s9 = sphi %s1662_s9, %s2084_s9  }
   0x4   : > { %s1687_s15 = sadd.s32 1, %s1640_s12   ;;  %s69_s16 = sadd.s32 1, %s1636_s11 }
   0x5   : > { %s66_s17 = ssub.s32 %s1640_s12, %s1687_s15  ;;  %p79_p0 = scmp.ne.s32.totalorder %s1636_s11, %s1632_s10 }
   0x6   : > { %p67_p1 = scmp.eq.s32.totalorder %s66_s17, 0  ;;  %p80_p2 = scmp.eq.s32.totalorder %s1683_s13, 3 }
   0x7   : > { %p85_p3 = scmp.ne.s32.totalorder %s1632_s10, %s1628_s9  ;;  %p86_p4 = scmp.eq.s32.totalorder %s1136_s14, 3 }
   0x8   : > { %s1698_s18 = scalar_select %p67_p1, %s1636_s11, %s69_s16  }
   0x9   : > { %p1700_p5 = por %p80_p2, %p79_p0  ;;  %p1704_p6 = por %p86_p4, %p85_p3 }
   0xa   : > { %p1139_p7 = scmp.ge.s32.totalorder %s1640_s12, 1  ;;  %p116_p8 = scmp.lt.s32.totalorder %s1640_s12, 5 }
   0xc   : > { %p117_p9 = pnand %p1139_p7, %p116_p8 }
   0xd   : > { %s1141_s21 = sshll.u32 (!%p117_p9), %s1683_s13, 6  ;;  %v209_v0 = vld [vmem:[%s2080_s1] sm:$0xff] (!%p117_p9)  ;;  %v210_v1 = vld [vmem:[%s2080_s1 + $0x8] sm:$0xff] (!%p117_p9)  ;;  %v211_v2 = vld [vmem:[%s2080_s1 + $0x10] sm:$0xff] (!%p117_p9)  ;;  %v1642_v3 = vmov (!%p117_p9), 0   ;;  %s1276_s23 = sshll.u32 (!%p117_p9), %s1683_s13, 13 }
   0xe   : > { %120 = sbr.rel (%p117_p9) target bundleno = 506 (0x1fa), region = 28  ;;  %1577 = vset.pattern.permute.xlu1 (!%p117_p9), %v1642_v3  ;;  %1576 = vset.pattern.permute.xlu0 (!%p117_p9), %v1642_v3  ;;  %p139_p10 = scmp.lt.s32.totalorder (!%p117_p9), %s1141_s21, 255  ;;  %v1485_v4 = vpack.c.bf16 (!%p117_p9), %v210_v1, %v209_v0  ;;  %v212_v5 = vld [vmem:[%s2080_s1 + $0x18] sm:$0xff] (!%p117_p9)  ;;  %v213_v7 = vld [vmem:[%s2080_s1 + $0x20] sm:$0xff] (!%p117_p9)  ;;  %v214_v8 = vld [vmem:[%s2080_s1 + $0x28] sm:$0xff] (!%p117_p9) }
   0xf   : > { %v1489_v6 = vpack.c.bf16 (!%p117_p9), %v212_v5, %v211_v2  ;;  %v1493_v9 = vpack.c.bf16 (!%p117_p9), %v214_v8, %v213_v7  ;;  %v215_v10 = vld [vmem:[%s2080_s1 + $0x30] sm:$0xff] (!%p117_p9)  ;;  %v216_v13 = vld [vmem:[%s2080_s1 + $0x38] sm:$0xff] (!%p117_p9)  ;;  %v217_v17 = vld [vmem:[%s2080_s1 + $0x40] sm:$0xff] (!%p117_p9)  ;;  %s2028_s27 = scalar_lea.hbm (!%p117_p9), %s2081_s2, %s1276_s23  ;;  %s1644_s29 = smov (!%p117_p9), [#allocation2]  }
  0x10   : > { %1486 = vmatprep.subr.bf16.mxu0 (!%p117_p9), %v1485_v4  ;;  %1517 = vmatprep.subr.bf16.mxu1 (!%p117_p9), %v1485_v4  ;;  %v1497_v16 = vpack.c.bf16 (!%p117_p9), %v216_v13, %v215_v10  ;;  %v218_v18 = vld [vmem:[%s2080_s1 + $0x48] sm:$0xff] (!%p117_p9)  ;;  %v219_v22 = vld [vmem:[%s2080_s1 + $0x50] sm:$0xff] (!%p117_p9)  ;;  %v220_v23 = vld [vmem:[%s2080_s1 + $0x58] sm:$0xff] (!%p117_p9)  ;;  %s1582_s30 = sshll.u32 (!%p117_p9), %s1644_s29, 4  ;;  %s1583_s30 = int_to_ptr.vmem [resolvable:$false] %s1582_s30 }
  0x11   : > { %1488 = vmatpush3.bf16.msra.mxu0 (!%p117_p9), %v1485_v4  ;;  %1525 = vmatpush3.bf16.msra.mxu1 (!%p117_p9), %v1485_v4  ;;  %v1501_v21 = vpack.c.bf16 (!%p117_p9), %v218_v18, %v217_v17  ;;  %v1505_v26 = vpack.c.bf16 (!%p117_p9), %v220_v23, %v219_v22  ;;  %v221_v27 = vld [vmem:[%s2080_s1 + $0x60] sm:$0xff] (!%p117_p9)  ;;  %v222_v28 = vld [vmem:[%s2080_s1 + $0x68] sm:$0xff] (!%p117_p9)  ;;  %v223_v32 = vld [vmem:[%s2080_s1 + $0x70] sm:$0xff] (!%p117_p9)  ;;  %v225_v23 = vlaneseq (!%p117_p9)  ;;  %s1584_s3 = scalar_lea.vmem (!%p117_p9), %s1583_s30, 16384 }
  0x12   : > { %1490 = vmatprep.subr.bf16.mxu0 (!%p117_p9), %v1489_v6  ;;  %1518 = vmatprep.subr.bf16.mxu1 (!%p117_p9), %v1489_v6  ;;  %v1509_v31 = vpack.c.bf16 (!%p117_p9), %v222_v28, %v221_v27  ;;  %v224_v33 = vld [vmem:[%s2080_s1 + $0x78] sm:$0xff] (!%p117_p9) }
  0x13   : > { %v1513_v36 = vpack.c.bf16 (!%p117_p9), %v224_v33, %v223_v32 }
  0x15   : > { %s2089_s21 = smov (!%p139_p10, %s1141_s21), 255  ;;  %1492 = vmatpush3.bf16.msra.mxu0 %v1489_v6  ;;  %1526 = vmatpush3.bf16.msra.mxu1 %v1489_v6 }
  0x16   : > { %s1142_s6 = sshll.u32 %s2089_s21, 3  ;;  %1494 = vmatprep.subr.bf16.mxu0 %v1493_v9  ;;  %1519 = vmatprep.subr.bf16.mxu1 %v1493_v9 }
  0x17   : > { %s1732_s14 = scalar_lea.vmem %s2079_s0, %s1142_s6 }
  0x18   : > { %v146_v11 = vld [vmem:[%s1732_s14 + $0x8] sm:$0xff]  ;;  %v145_v12 = vld [vmem:[%s1732_s14] sm:$0xff]  ;;  %v179_v19 = vld [vmem:[%s1732_s14 + $0x110] sm:$0xff] }
  0x19   : > { %231 = vperm.xlu1 %1577, %v146_v11   ;;  %228 = vperm.xlu0 %1576, %v145_v12   ;;  %v178_v14 = vld [vmem:[%s1732_s14 + $0x108] sm:$0xff]  ;;  %v177_v15 = vld [vmem:[%s1732_s14 + $0x100] sm:$0xff]  ;;  %v147_v20 = vld [vmem:[%s1732_s14 + $0x10] sm:$0xff] }
  0x1a   : > { %1496 = vmatpush3.bf16.msra.mxu0 %v1493_v9  ;;  %1527 = vmatpush3.bf16.msra.mxu1 %v1493_v9  ;;  %v180_v24 = vld [vmem:[%s1732_s14 + $0x118] sm:$0xff]  ;;  %v181_v29 = vld [vmem:[%s1732_s14 + $0x120] sm:$0xff]  ;;  %v182_v34 = vld [vmem:[%s1732_s14 + $0x128] sm:$0xff] }
  0x1b   : > { %1498 = vmatprep.subr.bf16.mxu0 %v1497_v16  ;;  %1520 = vmatprep.subr.bf16.mxu1 %v1497_v16  ;;  %v148_v25 = vld [vmem:[%s1732_s14 + $0x18] sm:$0xff]  ;;  %v149_v30 = vld [vmem:[%s1732_s14 + $0x20] sm:$0xff]  ;;  %v150_v35 = vld [vmem:[%s1732_s14 + $0x28] sm:$0xff] }
  0x1c   : > { %v183_v37 = vld [vmem:[%s1732_s14 + $0x130] sm:$0xff]  ;;  %v184_v39 = vld [vmem:[%s1732_s14 + $0x138] sm:$0xff]  ;;  %v185_v41 = vld [vmem:[%s1732_s14 + $0x140] sm:$0xff] }
  0x1d   : > { %327 = vperm.xlu1 %1577, %v178_v14   ;;  %324 = vperm.xlu0 %1576, %v177_v15   ;;  %v151_v38 = vld [vmem:[%s1732_s14 + $0x30] sm:$0xff]  ;;  %v152_v40 = vld [vmem:[%s1732_s14 + $0x38] sm:$0xff]  ;;  %v153_v42 = vld [vmem:[%s1732_s14 + $0x40] sm:$0xff] }
  0x1e   : > { %1500 = vmatpush3.bf16.msra.mxu0 %v1497_v16  ;;  %1528 = vmatpush3.bf16.msra.mxu1 %v1497_v16  ;;  %v186_v43 = vld [vmem:[%s1732_s14 + $0x148] sm:$0xff]  ;;  %v187_v45 = vld [vmem:[%s1732_s14 + $0x150] sm:$0xff]  ;;  %v188_v47 = vld [vmem:[%s1732_s14 + $0x158] sm:$0xff] }
  0x1f   : > { %1502 = vmatprep.subr.bf16.mxu0 %v1501_v21  ;;  %1521 = vmatprep.subr.bf16.mxu1 %v1501_v21  ;;  %v154_v44 = vld [vmem:[%s1732_s14 + $0x48] sm:$0xff]  ;;  %v155_v46 = vld [vmem:[%s1732_s14 + $0x50] sm:$0xff]  ;;  %v156_v48 = vld [vmem:[%s1732_s14 + $0x58] sm:$0xff] }
  0x20   : > { %v189_v49 = vld [vmem:[%s1732_s14 + $0x160] sm:$0xff]  ;;  %v190_v51 = vld [vmem:[%s1732_s14 + $0x168] sm:$0xff]  ;;  %v191_v53 = vld [vmem:[%s1732_s14 + $0x170] sm:$0xff] }
  0x21   : > { %330 = vperm.xlu1 %1577, %v179_v19   ;;  %234 = vperm.xlu0 %1576, %v147_v20   ;;  %v157_v50 = vld [vmem:[%s1732_s14 + $0x60] sm:$0xff]  ;;  %v158_v52 = vld [vmem:[%s1732_s14 + $0x68] sm:$0xff]  ;;  %v159_v54 = vld [vmem:[%s1732_s14 + $0x70] sm:$0xff] }
  0x22   : > { %1504 = vmatpush3.bf16.msra.mxu0 %v1501_v21  ;;  %1529 = vmatpush3.bf16.msra.mxu1 %v1501_v21  ;;  %v192_v55 = vld [vmem:[%s1732_s14 + $0x178] sm:$0xff]  ;;  %v193_v57 = vld [vmem:[%s1732_s14 + $0x180] sm:$0xff]  ;;  %v194_v59 = vld [vmem:[%s1732_s14 + $0x188] sm:$0xff] }
  0x23   : > { %1506 = vmatprep.subr.bf16.mxu0 %v1505_v26  ;;  %1522 = vmatprep.subr.bf16.mxu1 %v1505_v26  ;;  %v160_v56 = vld [vmem:[%s1732_s14 + $0x78] sm:$0xff]  ;;  %v161_v58 = vld [vmem:[%s1732_s14 + $0x80] sm:$0xff]  ;;  %v162_v60 = vld [vmem:[%s1732_s14 + $0x88] sm:$0xff] }
  0x24   : > { %v195_v61 = vld [vmem:[%s1732_s14 + $0x190] sm:$0xff]  ;;  %v196_v63 = vld [vmem:[%s1732_s14 + $0x198] sm:$0xff]  ;;  %v197_v1 = vld [vmem:[%s1732_s14 + $0x1a0] sm:$0xff] }
  0x25   : > { %333 = vperm.xlu1 %1577, %v180_v24   ;;  %237 = vperm.xlu0 %1576, %v148_v25   ;;  %v163_v62 = vld [vmem:[%s1732_s14 + $0x90] sm:$0xff]  ;;  %v164_v0 = vld [vmem:[%s1732_s14 + $0x98] sm:$0xff]  ;;  %v165_v2 = vld [vmem:[%s1732_s14 + $0xa0] sm:$0xff] }
  0x26   : > { %1508 = vmatpush3.bf16.msra.mxu0 %v1505_v26  ;;  %1530 = vmatpush3.bf16.msra.mxu1 %v1505_v26  ;;  %v198_v3 = vld [vmem:[%s1732_s14 + $0x1a8] sm:$0xff]  ;;  %v199_v5 = vld [vmem:[%s1732_s14 + $0x1b0] sm:$0xff]  ;;  %v200_v7 = vld [vmem:[%s1732_s14 + $0x1b8] sm:$0xff]  ;;  %v1828_v26 = vand.u32 127, %v225_v23 }
  0x27   : > { %1510 = vmatprep.subr.bf16.mxu0 %v1509_v31  ;;  %1523 = vmatprep.subr.bf16.mxu1 %v1509_v31  ;;  %v166_v4 = vld [vmem:[%s1732_s14 + $0xa8] sm:$0xff]  ;;  %v167_v6 = vld [vmem:[%s1732_s14 + $0xb0] sm:$0xff]  ;;  %v168_v8 = vld [vmem:[%s1732_s14 + $0xb8] sm:$0xff] }
  0x28   : > { %v201_v9 = vld [vmem:[%s1732_s14 + $0x1c0] sm:$0xff]  ;;  %v202_v11 = vld [vmem:[%s1732_s14 + $0x1c8] sm:$0xff]  ;;  %v203_v13 = vld [vmem:[%s1732_s14 + $0x1d0] sm:$0xff] }
  0x29   : > { %336 = vperm.xlu1 %1577, %v181_v29   ;;  %240 = vperm.xlu0 %1576, %v149_v30   ;;  %v169_v10 = vld [vmem:[%s1732_s14 + $0xc0] sm:$0xff]  ;;  %v170_v12 = vld [vmem:[%s1732_s14 + $0xc8] sm:$0xff]  ;;  %v171_v14 = vld [vmem:[%s1732_s14 + $0xd0] sm:$0xff]  ;;  %v1643_v29 = vmov 1.0  }
  0x2a   : > { %1512 = vmatpush3.bf16.msra.mxu0 %v1509_v31  ;;  %1531 = vmatpush3.bf16.msra.mxu1 %v1509_v31  ;;  %v204_v15 = vld [vmem:[%s1732_s14 + $0x1d8] sm:$0xff]  ;;  %v205_v17 = vld [vmem:[%s1732_s14 + $0x1e0] sm:$0xff]  ;;  %v206_v19 = vld [vmem:[%s1732_s14 + $0x1e8] sm:$0xff] }
  0x2b   : > { %1514 = vmatprep.subr.bf16.mxu0 %v1513_v36  ;;  %1524 = vmatprep.subr.bf16.mxu1 %v1513_v36  ;;  %v172_v16 = vld [vmem:[%s1732_s14 + $0xd8] sm:$0xff]  ;;  %v173_v18 = vld [vmem:[%s1732_s14 + $0xe0] sm:$0xff]  ;;  %v174_v20 = vld [vmem:[%s1732_s14 + $0xe8] sm:$0xff] }
  0x2c   : > { %v207_v21 = vld [vmem:[%s1732_s14 + $0x1f0] sm:$0xff]  ;;  %v208_v24 = vld [vmem:[%s1732_s14 + $0x1f8] sm:$0xff] }
  0x2d   : > { %339 = vperm.xlu1 %1577, %v182_v34   ;;  %243 = vperm.xlu0 %1576, %v150_v35   ;;  %v175_v22 = vld [vmem:[%s1732_s14 + $0xf0] sm:$0xff]  ;;  %v176_v25 = vld [vmem:[%s1732_s14 + $0xf8] sm:$0xff]  ;;  %s135_s14 = sand.u32 1, %s1632_s10  }
  0x2e   : > { %1516 = vmatpush3.bf16.msra.mxu0 %v1513_v36  ;;  %1532 = vmatpush3.bf16.msra.mxu1 %v1513_v36  ;;  %s1140_s21 = sshll.u32 %s135_s14, 9  ;;  %s2038_s13 = scalar_lea.sflag [#allocation3], %s135_s14 }
  0x2f   : > { %s1961_s22 = scalar_lea.vmem [#allocation2], %s1140_s21 }
  0x30   : > { %s1074_s24 = sshll.u32 %s1961_s22, 4  ;;  %s2030_s24 = int_to_ptr.vmem [resolvable:$true] %s1074_s24 }
  0x31   : > { %342 = vperm.xlu1 %1577, %v183_v37   ;;  %246 = vperm.xlu0 %1576, %v151_v38   ;;  %s1578_s28 = scalar_lea.vmem %s2030_s24, 8192  ;;  %p1585_p0 = scmp.lt.s32.totalorder %s2030_s24, %s1583_s30 }
  0x32   : > { %p1579_p11 = scmp.ne.s32.totalorder %s2030_s24, %s1578_s28  ;;  %p1586_p1 = scmp.lt.s32.totalorder %s1584_s3, %s1578_s28 }
  0x34   : > { %p1580_p12 = pnand %p1579_p11, %p1700_p5  ;;  %p1587_p2 = por %p1586_p1, %p1585_p0 }
  0x35   : > { %345 = vperm.xlu1 %1577, %v184_v39   ;;  %249 = vperm.xlu0 %1576, %v152_v40  }
  0x36   : > { %p1581_p13 = pneg %p1580_p12 }
  0x38   : > { %p1588_p3 = pnand %p1587_p2, %p1581_p13 }
  0x39   : > { %348 = vperm.xlu1 %1577, %v185_v41   ;;  %252 = vperm.xlu0 %1576, %v153_v42  }
  0x3d   : > { %351 = vperm.xlu1 %1577, %v186_v43   ;;  %255 = vperm.xlu0 %1576, %v154_v44  }
  0x41   : > { %354 = vperm.xlu1 %1577, %v187_v45   ;;  %258 = vperm.xlu0 %1576, %v155_v46  }
  0x45   : > { %357 = vperm.xlu1 %1577, %v188_v47   ;;  %261 = vperm.xlu0 %1576, %v156_v48  }
  0x49   : > { %360 = vperm.xlu1 %1577, %v189_v49   ;;  %264 = vperm.xlu0 %1576, %v157_v50  }
  0x4d   : > { %363 = vperm.xlu1 %1577, %v190_v51   ;;  %267 = vperm.xlu0 %1576, %v158_v52  }
  0x51   : > { %366 = vperm.xlu1 %1577, %v191_v53   ;;  %270 = vperm.xlu0 %1576, %v159_v54  }
  0x55   : > { %369 = vperm.xlu1 %1577, %v192_v55   ;;  %273 = vperm.xlu0 %1576, %v160_v56  }
  0x59   : > { %372 = vperm.xlu1 %1577, %v193_v57   ;;  %276 = vperm.xlu0 %1576, %v161_v58  }
  0x5d   : > { %375 = vperm.xlu1 %1577, %v194_v59   ;;  %279 = vperm.xlu0 %1576, %v162_v60  }
  0x61   : > { %378 = vperm.xlu1 %1577, %v195_v61   ;;  %282 = vperm.xlu0 %1576, %v163_v62  }
  0x65   : > { %381 = vperm.xlu1 %1577, %v196_v63   ;;  %285 = vperm.xlu0 %1576, %v164_v0  }
  0x69   : > { %384 = vperm.xlu1 %1577, %v197_v1   ;;  %288 = vperm.xlu0 %1576, %v165_v2  }
  0x6d   : > { %387 = vperm.xlu1 %1577, %v198_v3   ;;  %291 = vperm.xlu0 %1576, %v166_v4  }
  0x71   : > { %390 = vperm.xlu1 %1577, %v199_v5   ;;  %294 = vperm.xlu0 %1576, %v167_v6  }
  0x75   : > { %393 = vperm.xlu1 %1577, %v200_v7   ;;  %297 = vperm.xlu0 %1576, %v168_v8  }
  0x79   : > { %396 = vperm.xlu1 %1577, %v201_v9   ;;  %300 = vperm.xlu0 %1576, %v169_v10  }
  0x7d   : > { %399 = vperm.xlu1 %1577, %v202_v11   ;;  %303 = vperm.xlu0 %1576, %v170_v12  }
  0x81   : > { %402 = vperm.xlu1 %1577, %v203_v13   ;;  %306 = vperm.xlu0 %1576, %v171_v14  }
  0x85   : > { %405 = vperm.xlu1 %1577, %v204_v15   ;;  %309 = vperm.xlu0 %1576, %v172_v16  }
  0x89   : > { %408 = vperm.xlu1 %1577, %v205_v17   ;;  %312 = vperm.xlu0 %1576, %v173_v18  }
  0x8d   : > { %411 = vperm.xlu1 %1577, %v206_v19   ;;  %315 = vperm.xlu0 %1576, %v174_v20  }
  0x91   : > { %414 = vperm.xlu1 %1577, %v207_v21   ;;  %318 = vperm.xlu0 %1576, %v175_v22  }
  0x95   : > { %417 = vperm.xlu1 %1577, %v208_v24   ;;  %321 = vperm.xlu0 %1576, %v176_v25  }
  0x98   : > { %v232_v27 = vpop.permute.xlu1 %231  ;;  %v229_v28 = vpop.permute.xlu0 %228 }
  0x99   : > { %vm420_vm0 = vcmp.eq.s32.totalorder %v232_v27, %v1828_v26  ;;  %vm419_vm1 = vcmp.eq.s32.totalorder %v229_v28, %v1828_v26 }
  0x9a   : > { %1389 = vmatprep.mubr.msk.f32.mxu0 %vm419_vm1, %v1643_v29 }
  0x9b   : > { %1390 = vmatmul.mubr.msk.f32.vlgmr.msra.gmra.mrb[0].mxu0 %vm420_vm0, %v1643_v29 }
  0x9c   : > { %v328_v30 = vpop.permute.xlu1 %327  ;;  %v325_v31 = vpop.permute.xlu0 %324 }
  0x9d   : > { %vm452_vm2 = vcmp.eq.s32.totalorder %v328_v30, %v1828_v26  ;;  %vm451_vm3 = vcmp.eq.s32.totalorder %v325_v31, %v1828_v26 }
  0x9e   : > { %1437 = vmatprep.mubr.msk.f32.mxu1 %vm451_vm3, %v1643_v29 }
  0x9f   : > { %1438 = vmatmul.mubr.msk.f32.vlgmr.msra.gmra.mrb[0].mxu1 %vm452_vm2, %v1643_v29 }
  0xa0   : > { %v331_v32 = vpop.permute.xlu1 %330  ;;  %v235_v33 = vpop.permute.xlu0 %234 }
  0xa1   : > { %vm453_vm4 = vcmp.eq.s32.totalorder %v331_v32, %v1828_v26  ;;  %vm421_vm5 = vcmp.eq.s32.totalorder %v235_v33, %v1828_v26 }
  0xa2   : > { %1392 = vmatprep.mubr.msk.f32.mxu0 %vm421_vm5, %v1643_v29  ;;  %1440 = vmatprep.mubr.msk.f32.mxu1 %vm453_vm4, %v1643_v29 }
  0xa4   : > { %v334_v34 = vpop.permute.xlu1 %333  ;;  %v238_v35 = vpop.permute.xlu0 %237 }
  0xa5   : > { %vm454_vm6 = vcmp.eq.s32.totalorder %v334_v34, %v1828_v26  ;;  %vm422_vm7 = vcmp.eq.s32.totalorder %v238_v35, %v1828_v26 }
  0xa6   : > { %1393 = vmatmul.mubr.msk.f32.gmra.mrb[2].mxu0 %vm422_vm7, %v1643_v29  ;;  %1441 = vmatmul.mubr.msk.f32.gmra.mrb[2].mxu1 %vm454_vm6, %v1643_v29 }
  0xa8   : > { %v337_v36 = vpop.permute.xlu1 %336  ;;  %v241_v37 = vpop.permute.xlu0 %240 }
  0xa9   : > { %vm455_vm8 = vcmp.eq.s32.totalorder %v337_v36, %v1828_v26  ;;  %vm423_vm9 = vcmp.eq.s32.totalorder %v241_v37, %v1828_v26 }
  0xaa   : > { %1395 = vmatprep.mubr.msk.f32.mxu0 %vm423_vm9, %v1643_v29  ;;  %1443 = vmatprep.mubr.msk.f32.mxu1 %vm455_vm8, %v1643_v29 }
  0xac   : > { %v340_v38 = vpop.permute.xlu1 %339  ;;  %v244_v39 = vpop.permute.xlu0 %243 }
  0xad   : > { %vm456_vm10 = vcmp.eq.s32.totalorder %v340_v38, %v1828_v26  ;;  %vm424_vm11 = vcmp.eq.s32.totalorder %v244_v39, %v1828_v26 }
  0xae   : > { %1396 = vmatmul.mubr.msk.f32.gmra.mrb[4].mxu0 %vm424_vm11, %v1643_v29  ;;  %1444 = vmatmul.mubr.msk.f32.gmra.mrb[4].mxu1 %vm456_vm10, %v1643_v29 }
  0xb0   : > { %v343_v40 = vpop.permute.xlu1 %342  ;;  %v247_v41 = vpop.permute.xlu0 %246 }
  0xb1   : > { %vm457_vm12 = vcmp.eq.s32.totalorder %v343_v40, %v1828_v26  ;;  %vm425_vm13 = vcmp.eq.s32.totalorder %v247_v41, %v1828_v26 }
  0xb2   : > { %1398 = vmatprep.mubr.msk.f32.mxu0 %vm425_vm13, %v1643_v29  ;;  %1446 = vmatprep.mubr.msk.f32.mxu1 %vm457_vm12, %v1643_v29 }
  0xb4   : > { %v346_v42 = vpop.permute.xlu1 %345  ;;  %v250_v43 = vpop.permute.xlu0 %249 }
  0xb5   : > { %vm458_vm14 = vcmp.eq.s32.totalorder %v346_v42, %v1828_v26  ;;  %vm426_vm15 = vcmp.eq.s32.totalorder %v250_v43, %v1828_v26 }
  0xb6   : > { %1399 = vmatmul.mubr.msk.f32.gmra.mrb[6].mxu0 %vm426_vm15, %v1643_v29  ;;  %1447 = vmatmul.mubr.msk.f32.gmra.mrb[6].mxu1 %vm458_vm14, %v1643_v29 }
  0xb8   : > { %v349_v44 = vpop.permute.xlu1 %348  ;;  %v253_v45 = vpop.permute.xlu0 %252 }
  0xb9   : > { %vm459_vm0 = vcmp.eq.s32.totalorder %v349_v44, %v1828_v26  ;;  %vm427_vm1 = vcmp.eq.s32.totalorder %v253_v45, %v1828_v26 }
  0xba   : > { %1401 = vmatprep.mubr.msk.f32.mxu0 %vm427_vm1, %v1643_v29  ;;  %1449 = vmatprep.mubr.msk.f32.mxu1 %vm459_vm0, %v1643_v29 }
  0xbc   : > { %v352_v46 = vpop.permute.xlu1 %351  ;;  %v256_v47 = vpop.permute.xlu0 %255 }
  0xbd   : > { %vm460_vm2 = vcmp.eq.s32.totalorder %v352_v46, %v1828_v26  ;;  %vm428_vm3 = vcmp.eq.s32.totalorder %v256_v47, %v1828_v26 }
  0xbe   : > { %1402 = vmatmul.mubr.msk.f32.gmra.mrb[8].mxu0 %vm428_vm3, %v1643_v29  ;;  %1450 = vmatmul.mubr.msk.f32.gmra.mrb[8].mxu1 %vm460_vm2, %v1643_v29 }
  0xc0   : > { %v355_v48 = vpop.permute.xlu1 %354  ;;  %v259_v49 = vpop.permute.xlu0 %258 }
  0xc1   : > { %vm461_vm4 = vcmp.eq.s32.totalorder %v355_v48, %v1828_v26  ;;  %vm429_vm5 = vcmp.eq.s32.totalorder %v259_v49, %v1828_v26 }
  0xc2   : > { %1404 = vmatprep.mubr.msk.f32.mxu0 %vm429_vm5, %v1643_v29  ;;  %1452 = vmatprep.mubr.msk.f32.mxu1 %vm461_vm4, %v1643_v29 }
  0xc4   : > { %v358_v50 = vpop.permute.xlu1 %357  ;;  %v262_v51 = vpop.permute.xlu0 %261 }
  0xc5   : > { %vm462_vm6 = vcmp.eq.s32.totalorder %v358_v50, %v1828_v26  ;;  %vm430_vm7 = vcmp.eq.s32.totalorder %v262_v51, %v1828_v26 }
  0xc6   : > { %1405 = vmatmul.mubr.msk.f32.gmra.mrb[10].mxu0 %vm430_vm7, %v1643_v29  ;;  %1453 = vmatmul.mubr.msk.f32.gmra.mrb[10].mxu1 %vm462_vm6, %v1643_v29 }
  0xc8   : > { %v361_v52 = vpop.permute.xlu1 %360  ;;  %v265_v53 = vpop.permute.xlu0 %264 }
  0xc9   : > { %vm463_vm8 = vcmp.eq.s32.totalorder %v361_v52, %v1828_v26  ;;  %vm431_vm9 = vcmp.eq.s32.totalorder %v265_v53, %v1828_v26 }
  0xca   : > { %1407 = vmatprep.mubr.msk.f32.mxu0 %vm431_vm9, %v1643_v29  ;;  %1455 = vmatprep.mubr.msk.f32.mxu1 %vm463_vm8, %v1643_v29 }
  0xcc   : > { %v364_v54 = vpop.permute.xlu1 %363  ;;  %v268_v55 = vpop.permute.xlu0 %267 }
  0xcd   : > { %vm464_vm10 = vcmp.eq.s32.totalorder %v364_v54, %v1828_v26  ;;  %vm432_vm11 = vcmp.eq.s32.totalorder %v268_v55, %v1828_v26 }
  0xce   : > { %1408 = vmatmul.mubr.msk.f32.gmra.mrb[12].mxu0 %vm432_vm11, %v1643_v29  ;;  %1456 = vmatmul.mubr.msk.f32.gmra.mrb[12].mxu1 %vm464_vm10, %v1643_v29 }
  0xd0   : > { %v367_v56 = vpop.permute.xlu1 %366  ;;  %v271_v57 = vpop.permute.xlu0 %270 }
  0xd1   : > { %vm465_vm12 = vcmp.eq.s32.totalorder %v367_v56, %v1828_v26  ;;  %vm433_vm13 = vcmp.eq.s32.totalorder %v271_v57, %v1828_v26 }
  0xd2   : > { %1410 = vmatprep.mubr.msk.f32.mxu0 %vm433_vm13, %v1643_v29  ;;  %1458 = vmatprep.mubr.msk.f32.mxu1 %vm465_vm12, %v1643_v29 }
  0xd4   : > { %v370_v58 = vpop.permute.xlu1 %369  ;;  %v274_v59 = vpop.permute.xlu0 %273 }
  0xd5   : > { %vm466_vm14 = vcmp.eq.s32.totalorder %v370_v58, %v1828_v26  ;;  %vm434_vm15 = vcmp.eq.s32.totalorder %v274_v59, %v1828_v26 }
  0xd6   : > { %1411 = vmatmul.mubr.msk.f32.gmra.mrb[14].mxu0 %vm434_vm15, %v1643_v29  ;;  %1459 = vmatmul.mubr.msk.f32.gmra.mrb[14].mxu1 %vm466_vm14, %v1643_v29 }
  0xd8   : > { %v373_v60 = vpop.permute.xlu1 %372  ;;  %v277_v61 = vpop.permute.xlu0 %276 }
  0xd9   : > { %vm467_vm0 = vcmp.eq.s32.totalorder %v373_v60, %v1828_v26  ;;  %vm435_vm1 = vcmp.eq.s32.totalorder %v277_v61, %v1828_v26 }
  0xda   : > { %1413 = vmatprep.mubr.msk.f32.mxu0 %vm435_vm1, %v1643_v29  ;;  %1461 = vmatprep.mubr.msk.f32.mxu1 %vm467_vm0, %v1643_v29 }
  0xdc   : > { %v376_v62 = vpop.permute.xlu1 %375  ;;  %v280_v63 = vpop.permute.xlu0 %279 }
  0xdd   : > { %vm468_vm2 = vcmp.eq.s32.totalorder %v376_v62, %v1828_v26  ;;  %vm436_vm3 = vcmp.eq.s32.totalorder %v280_v63, %v1828_v26 }
  0xde   : > { %1414 = vmatmul.mubr.msk.f32.gmra.mrb[16].mxu0 %vm436_vm3, %v1643_v29  ;;  %1462 = vmatmul.mubr.msk.f32.gmra.mrb[16].mxu1 %vm468_vm2, %v1643_v29 }
  0xe0   : > { %v379_v0 = vpop.permute.xlu1 %378  ;;  %v283_v1 = vpop.permute.xlu0 %282 }
  0xe1   : > { %vm469_vm4 = vcmp.eq.s32.totalorder %v379_v0, %v1828_v26  ;;  %vm437_vm5 = vcmp.eq.s32.totalorder %v283_v1, %v1828_v26 }
  0xe2   : > { %1416 = vmatprep.mubr.msk.f32.mxu0 %vm437_vm5, %v1643_v29  ;;  %1464 = vmatprep.mubr.msk.f32.mxu1 %vm469_vm4, %v1643_v29 }
  0xe4   : > { %v382_v2 = vpop.permute.xlu1 %381  ;;  %v286_v3 = vpop.permute.xlu0 %285 }
  0xe5   : > { %vm470_vm6 = vcmp.eq.s32.totalorder %v382_v2, %v1828_v26  ;;  %vm438_vm7 = vcmp.eq.s32.totalorder %v286_v3, %v1828_v26 }
  0xe6   : > { %1417 = vmatmul.mubr.msk.f32.gmra.mrb[18].mxu0 %vm438_vm7, %v1643_v29  ;;  %1465 = vmatmul.mubr.msk.f32.gmra.mrb[18].mxu1 %vm470_vm6, %v1643_v29 }
  0xe8   : > { %v385_v4 = vpop.permute.xlu1 %384  ;;  %v289_v5 = vpop.permute.xlu0 %288 }
  0xe9   : > { %vm471_vm8 = vcmp.eq.s32.totalorder %v385_v4, %v1828_v26  ;;  %vm439_vm9 = vcmp.eq.s32.totalorder %v289_v5, %v1828_v26 }
  0xea   : > { %1419 = vmatprep.mubr.msk.f32.mxu0 %vm439_vm9, %v1643_v29  ;;  %1467 = vmatprep.mubr.msk.f32.mxu1 %vm471_vm8, %v1643_v29 }
  0xec   : > { %v388_v6 = vpop.permute.xlu1 %387  ;;  %v292_v7 = vpop.permute.xlu0 %291 }
  0xed   : > { %vm472_vm10 = vcmp.eq.s32.totalorder %v388_v6, %v1828_v26  ;;  %vm440_vm11 = vcmp.eq.s32.totalorder %v292_v7, %v1828_v26 }
  0xee   : > { %1420 = vmatmul.mubr.msk.f32.gmra.mrb[20].mxu0 %vm440_vm11, %v1643_v29  ;;  %1468 = vmatmul.mubr.msk.f32.gmra.mrb[20].mxu1 %vm472_vm10, %v1643_v29 }
  0xf0   : > { %v391_v8 = vpop.permute.xlu1 %390  ;;  %v295_v9 = vpop.permute.xlu0 %294 }
  0xf1   : > { %vm473_vm12 = vcmp.eq.s32.totalorder %v391_v8, %v1828_v26  ;;  %vm441_vm13 = vcmp.eq.s32.totalorder %v295_v9, %v1828_v26 }
  0xf2   : > { %1422 = vmatprep.mubr.msk.f32.mxu0 %vm441_vm13, %v1643_v29  ;;  %1470 = vmatprep.mubr.msk.f32.mxu1 %vm473_vm12, %v1643_v29 }
  0xf4   : > { %v394_v10 = vpop.permute.xlu1 %393  ;;  %v298_v11 = vpop.permute.xlu0 %297 }
  0xf5   : > { %vm474_vm14 = vcmp.eq.s32.totalorder %v394_v10, %v1828_v26  ;;  %vm442_vm15 = vcmp.eq.s32.totalorder %v298_v11, %v1828_v26 }
  0xf6   : > { %1423 = vmatmul.mubr.msk.f32.gmra.mrb[22].mxu0 %vm442_vm15, %v1643_v29  ;;  %1471 = vmatmul.mubr.msk.f32.gmra.mrb[22].mxu1 %vm474_vm14, %v1643_v29 }
  0xf8   : > { %v397_v12 = vpop.permute.xlu1 %396  ;;  %v301_v13 = vpop.permute.xlu0 %300 }
  0xf9   : > { %vm475_vm0 = vcmp.eq.s32.totalorder %v397_v12, %v1828_v26  ;;  %vm443_vm1 = vcmp.eq.s32.totalorder %v301_v13, %v1828_v26 }
  0xfa   : > { %1425 = vmatprep.mubr.msk.f32.mxu0 %vm443_vm1, %v1643_v29  ;;  %1473 = vmatprep.mubr.msk.f32.mxu1 %vm475_vm0, %v1643_v29 }
  0xfc   : > { %v400_v14 = vpop.permute.xlu1 %399  ;;  %v304_v15 = vpop.permute.xlu0 %303 }
  0xfd   : > { %vm476_vm2 = vcmp.eq.s32.totalorder %v400_v14, %v1828_v26  ;;  %vm444_vm3 = vcmp.eq.s32.totalorder %v304_v15, %v1828_v26 }
  0xfe   : > { %1426 = vmatmul.mubr.msk.f32.gmra.mrb[24].mxu0 %vm444_vm3, %v1643_v29  ;;  %1474 = vmatmul.mubr.msk.f32.gmra.mrb[24].mxu1 %vm476_vm2, %v1643_v29 }
 0x100   : > { %v403_v16 = vpop.permute.xlu1 %402  ;;  %v307_v17 = vpop.permute.xlu0 %306 }
 0x101   : > { %vm477_vm4 = vcmp.eq.s32.totalorder %v403_v16, %v1828_v26  ;;  %vm445_vm5 = vcmp.eq.s32.totalorder %v307_v17, %v1828_v26 }
 0x102   : > { %1428 = vmatprep.mubr.msk.f32.mxu0 %vm445_vm5, %v1643_v29  ;;  %1476 = vmatprep.mubr.msk.f32.mxu1 %vm477_vm4, %v1643_v29 }
 0x104   : > { %v406_v18 = vpop.permute.xlu1 %405  ;;  %v310_v19 = vpop.permute.xlu0 %309 }
 0x105   : > { %vm478_vm6 = vcmp.eq.s32.totalorder %v406_v18, %v1828_v26  ;;  %vm446_vm7 = vcmp.eq.s32.totalorder %v310_v19, %v1828_v26 }
 0x106   : > { %1429 = vmatmul.mubr.msk.f32.gmra.mrb[26].mxu0 %vm446_vm7, %v1643_v29  ;;  %1477 = vmatmul.mubr.msk.f32.gmra.mrb[26].mxu1 %vm478_vm6, %v1643_v29 }
 0x108   : > { %v409_v20 = vpop.permute.xlu1 %408  ;;  %v313_v21 = vpop.permute.xlu0 %312 }
 0x109   : > { %vm479_vm8 = vcmp.eq.s32.totalorder %v409_v20, %v1828_v26  ;;  %vm447_vm9 = vcmp.eq.s32.totalorder %v313_v21, %v1828_v26 }
 0x10a   : > { %1431 = vmatprep.mubr.msk.f32.mxu0 %vm447_vm9, %v1643_v29  ;;  %1479 = vmatprep.mubr.msk.f32.mxu1 %vm479_vm8, %v1643_v29 }
 0x10c   : > { %v412_v22 = vpop.permute.xlu1 %411  ;;  %v316_v23 = vpop.permute.xlu0 %315 }
 0x10d   : > { %vm480_vm10 = vcmp.eq.s32.totalorder %v412_v22, %v1828_v26  ;;  %vm448_vm11 = vcmp.eq.s32.totalorder %v316_v23, %v1828_v26 }
 0x10e   : > { %1432 = vmatmul.mubr.msk.f32.gmra.mrb[28].mxu0 %vm448_vm11, %v1643_v29  ;;  %1480 = vmatmul.mubr.msk.f32.gmra.mrb[28].mxu1 %vm480_vm10, %v1643_v29 }
 0x110   : > { %v415_v24 = vpop.permute.xlu1 %414  ;;  %v319_v25 = vpop.permute.xlu0 %318 }
 0x111   : > { %vm481_vm12 = vcmp.eq.s32.totalorder %v415_v24, %v1828_v26  ;;  %vm449_vm13 = vcmp.eq.s32.totalorder %v319_v25, %v1828_v26 }
 0x112   : > { %1434 = vmatprep.mubr.msk.f32.mxu0 %vm449_vm13, %v1643_v29  ;;  %1482 = vmatprep.mubr.msk.f32.mxu1 %vm481_vm12, %v1643_v29 }
 0x114   : > { %v418_v27 = vpop.permute.xlu1 %417  ;;  %v322_v28 = vpop.permute.xlu0 %321 }
 0x115   : > { %vm482_vm14 = vcmp.eq.s32.totalorder %v418_v27, %v1828_v26  ;;  %vm450_vm15 = vcmp.eq.s32.totalorder %v322_v28, %v1828_v26 }
 0x116   : > { %1435 = vmatmul.mubr.msk.f32.gmra.mrb[30].mxu0 %vm450_vm15, %v1643_v29  ;;  %1483 = vmatmul.mubr.msk.f32.gmra.mrb[30].mxu1 %vm482_vm14, %v1643_v29 }
 0x16e   : > { %v1391_v30 = vpop.f32.mrb[0].mxu0 }
 0x16f   : > { %997 = vst [vmem:[%s1961_s22 + $0x8] sm:$0xff] %v1391_v30  ;;  %v677_v26 = vpop.f32.mrb[1].mxu0 }
 0x170   : > { %996 = vst [vmem:[%s1961_s22] sm:$0xff] %v677_v26 }
 0x172   : > { %v1439_v29 = vpop.f32.mrb[0].mxu1 }
 0x173   : > { %1029 = vst [vmem:[%s1961_s22 + $0x108] sm:$0xff] %v1439_v29  ;;  %v837_v31 = vpop.f32.mrb[1].mxu1 }
 0x174   : > { %1028 = vst [vmem:[%s1961_s22 + $0x100] sm:$0xff] %v837_v31 }
 0x179   : > { %v1394_v32 = vpop.f32.mrb[2].mxu0  ;;  %v1442_v33 = vpop.f32.mrb[2].mxu1 }
 0x17a   : > { %999 = vst [vmem:[%s1961_s22 + $0x18] sm:$0xff] %v1394_v32  ;;  %1031 = vst [vmem:[%s1961_s22 + $0x118] sm:$0xff] %v1442_v33  ;;  %v687_v34 = vpop.f32.mrb[3].mxu0  ;;  %v847_v35 = vpop.f32.mrb[3].mxu1 }
 0x17b   : > { %998 = vst [vmem:[%s1961_s22 + $0x10] sm:$0xff] %v687_v34  ;;  %1030 = vst [vmem:[%s1961_s22 + $0x110] sm:$0xff] %v847_v35 }
 0x181   : > { %v1397_v36 = vpop.f32.mrb[4].mxu0  ;;  %v1445_v37 = vpop.f32.mrb[4].mxu1 }
 0x182   : > { %1001 = vst [vmem:[%s1961_s22 + $0x28] sm:$0xff] %v1397_v36  ;;  %1033 = vst [vmem:[%s1961_s22 + $0x128] sm:$0xff] %v1445_v37  ;;  %v697_v38 = vpop.f32.mrb[5].mxu0  ;;  %v857_v39 = vpop.f32.mrb[5].mxu1 }
 0x183   : > { %1000 = vst [vmem:[%s1961_s22 + $0x20] sm:$0xff] %v697_v38  ;;  %1032 = vst [vmem:[%s1961_s22 + $0x120] sm:$0xff] %v857_v39 }
 0x189   : > { %v1400_v40 = vpop.f32.mrb[6].mxu0  ;;  %v1448_v41 = vpop.f32.mrb[6].mxu1 }
 0x18a   : > { %1003 = vst [vmem:[%s1961_s22 + $0x38] sm:$0xff] %v1400_v40  ;;  %1035 = vst [vmem:[%s1961_s22 + $0x138] sm:$0xff] %v1448_v41  ;;  %v707_v42 = vpop.f32.mrb[7].mxu0  ;;  %v867_v43 = vpop.f32.mrb[7].mxu1 }
 0x18b   : > { %1002 = vst [vmem:[%s1961_s22 + $0x30] sm:$0xff] %v707_v42  ;;  %1034 = vst [vmem:[%s1961_s22 + $0x130] sm:$0xff] %v867_v43 }
 0x191   : > { %v1403_v44 = vpop.f32.mrb[8].mxu0  ;;  %v1451_v45 = vpop.f32.mrb[8].mxu1 }
 0x192   : > { %1005 = vst [vmem:[%s1961_s22 + $0x48] sm:$0xff] %v1403_v44  ;;  %1037 = vst [vmem:[%s1961_s22 + $0x148] sm:$0xff] %v1451_v45  ;;  %v717_v46 = vpop.f32.mrb[9].mxu0  ;;  %v877_v47 = vpop.f32.mrb[9].mxu1 }
 0x193   : > { %1004 = vst [vmem:[%s1961_s22 + $0x40] sm:$0xff] %v717_v46  ;;  %1036 = vst [vmem:[%s1961_s22 + $0x140] sm:$0xff] %v877_v47 }
 0x199   : > { %v1406_v48 = vpop.f32.mrb[10].mxu0  ;;  %v1454_v49 = vpop.f32.mrb[10].mxu1 }
 0x19a   : > { %1007 = vst [vmem:[%s1961_s22 + $0x58] sm:$0xff] %v1406_v48  ;;  %1039 = vst [vmem:[%s1961_s22 + $0x158] sm:$0xff] %v1454_v49  ;;  %v727_v50 = vpop.f32.mrb[11].mxu0  ;;  %v887_v51 = vpop.f32.mrb[11].mxu1 }
 0x19b   : > { %1006 = vst [vmem:[%s1961_s22 + $0x50] sm:$0xff] %v727_v50  ;;  %1038 = vst [vmem:[%s1961_s22 + $0x150] sm:$0xff] %v887_v51 }
 0x1a1   : > { %v1409_v52 = vpop.f32.mrb[12].mxu0  ;;  %v1457_v53 = vpop.f32.mrb[12].mxu1 }
 0x1a2   : > { %1009 = vst [vmem:[%s1961_s22 + $0x68] sm:$0xff] %v1409_v52  ;;  %1041 = vst [vmem:[%s1961_s22 + $0x168] sm:$0xff] %v1457_v53  ;;  %v737_v54 = vpop.f32.mrb[13].mxu0  ;;  %v897_v55 = vpop.f32.mrb[13].mxu1 }
 0x1a3   : > { %1008 = vst [vmem:[%s1961_s22 + $0x60] sm:$0xff] %v737_v54  ;;  %1040 = vst [vmem:[%s1961_s22 + $0x160] sm:$0xff] %v897_v55 }
 0x1a9   : > { %v1412_v56 = vpop.f32.mrb[14].mxu0  ;;  %v1460_v57 = vpop.f32.mrb[14].mxu1 }
 0x1aa   : > { %1011 = vst [vmem:[%s1961_s22 + $0x78] sm:$0xff] %v1412_v56  ;;  %1043 = vst [vmem:[%s1961_s22 + $0x178] sm:$0xff] %v1460_v57  ;;  %v747_v58 = vpop.f32.mrb[15].mxu0  ;;  %v907_v59 = vpop.f32.mrb[15].mxu1 }
 0x1ab   : > { %1010 = vst [vmem:[%s1961_s22 + $0x70] sm:$0xff] %v747_v58  ;;  %1042 = vst [vmem:[%s1961_s22 + $0x170] sm:$0xff] %v907_v59 }
 0x1b1   : > { %v1415_v60 = vpop.f32.mrb[16].mxu0  ;;  %v1463_v61 = vpop.f32.mrb[16].mxu1 }
 0x1b2   : > { %1013 = vst [vmem:[%s1961_s22 + $0x88] sm:$0xff] %v1415_v60  ;;  %1045 = vst [vmem:[%s1961_s22 + $0x188] sm:$0xff] %v1463_v61  ;;  %v757_v62 = vpop.f32.mrb[17].mxu0  ;;  %v917_v63 = vpop.f32.mrb[17].mxu1 }
 0x1b3   : > { %1012 = vst [vmem:[%s1961_s22 + $0x80] sm:$0xff] %v757_v62  ;;  %1044 = vst [vmem:[%s1961_s22 + $0x180] sm:$0xff] %v917_v63 }
 0x1b9   : > { %v1418_v0 = vpop.f32.mrb[18].mxu0  ;;  %v1466_v1 = vpop.f32.mrb[18].mxu1 }
 0x1ba   : > { %1015 = vst [vmem:[%s1961_s22 + $0x98] sm:$0xff] %v1418_v0  ;;  %1047 = vst [vmem:[%s1961_s22 + $0x198] sm:$0xff] %v1466_v1  ;;  %v767_v2 = vpop.f32.mrb[19].mxu0  ;;  %v927_v3 = vpop.f32.mrb[19].mxu1 }
 0x1bb   : > { %1014 = vst [vmem:[%s1961_s22 + $0x90] sm:$0xff] %v767_v2  ;;  %1046 = vst [vmem:[%s1961_s22 + $0x190] sm:$0xff] %v927_v3 }
 0x1c1   : > { %v1421_v4 = vpop.f32.mrb[20].mxu0  ;;  %v1469_v5 = vpop.f32.mrb[20].mxu1 }
 0x1c2   : > { %1017 = vst [vmem:[%s1961_s22 + $0xa8] sm:$0xff] %v1421_v4  ;;  %1049 = vst [vmem:[%s1961_s22 + $0x1a8] sm:$0xff] %v1469_v5  ;;  %v777_v6 = vpop.f32.mrb[21].mxu0  ;;  %v937_v7 = vpop.f32.mrb[21].mxu1 }
 0x1c3   : > { %1016 = vst [vmem:[%s1961_s22 + $0xa0] sm:$0xff] %v777_v6  ;;  %1048 = vst [vmem:[%s1961_s22 + $0x1a0] sm:$0xff] %v937_v7 }
 0x1c9   : > { %v1424_v8 = vpop.f32.mrb[22].mxu0  ;;  %v1472_v9 = vpop.f32.mrb[22].mxu1 }
 0x1ca   : > { %1019 = vst [vmem:[%s1961_s22 + $0xb8] sm:$0xff] %v1424_v8  ;;  %1051 = vst [vmem:[%s1961_s22 + $0x1b8] sm:$0xff] %v1472_v9  ;;  %v787_v10 = vpop.f32.mrb[23].mxu0  ;;  %v947_v11 = vpop.f32.mrb[23].mxu1 }
 0x1cb   : > { %1018 = vst [vmem:[%s1961_s22 + $0xb0] sm:$0xff] %v787_v10  ;;  %1050 = vst [vmem:[%s1961_s22 + $0x1b0] sm:$0xff] %v947_v11 }
 0x1d1   : > { %v1427_v12 = vpop.f32.mrb[24].mxu0  ;;  %v1475_v13 = vpop.f32.mrb[24].mxu1 }
 0x1d2   : > { %1021 = vst [vmem:[%s1961_s22 + $0xc8] sm:$0xff] %v1427_v12  ;;  %1053 = vst [vmem:[%s1961_s22 + $0x1c8] sm:$0xff] %v1475_v13  ;;  %v797_v14 = vpop.f32.mrb[25].mxu0  ;;  %v957_v15 = vpop.f32.mrb[25].mxu1 }
 0x1d3   : > { %1020 = vst [vmem:[%s1961_s22 + $0xc0] sm:$0xff] %v797_v14  ;;  %1052 = vst [vmem:[%s1961_s22 + $0x1c0] sm:$0xff] %v957_v15 }
 0x1d9   : > { %v1430_v16 = vpop.f32.mrb[26].mxu0  ;;  %v1478_v17 = vpop.f32.mrb[26].mxu1 }
 0x1da   : > { %1023 = vst [vmem:[%s1961_s22 + $0xd8] sm:$0xff] %v1430_v16  ;;  %1055 = vst [vmem:[%s1961_s22 + $0x1d8] sm:$0xff] %v1478_v17  ;;  %v807_v18 = vpop.f32.mrb[27].mxu0  ;;  %v967_v19 = vpop.f32.mrb[27].mxu1 }
 0x1db   : > { %1022 = vst [vmem:[%s1961_s22 + $0xd0] sm:$0xff] %v807_v18  ;;  %1054 = vst [vmem:[%s1961_s22 + $0x1d0] sm:$0xff] %v967_v19 }
 0x1e1   : > { %v1433_v20 = vpop.f32.mrb[28].mxu0  ;;  %v1481_v21 = vpop.f32.mrb[28].mxu1 }
 0x1e2   : > { %1025 = vst [vmem:[%s1961_s22 + $0xe8] sm:$0xff] %v1433_v20  ;;  %1057 = vst [vmem:[%s1961_s22 + $0x1e8] sm:$0xff] %v1481_v21  ;;  %v817_v22 = vpop.f32.mrb[29].mxu0  ;;  %v977_v23 = vpop.f32.mrb[29].mxu1 }
 0x1e3   : > { %1024 = vst [vmem:[%s1961_s22 + $0xe0] sm:$0xff] %v817_v22  ;;  %1056 = vst [vmem:[%s1961_s22 + $0x1e0] sm:$0xff] %v977_v23 }
 0x1e9   : > { %v1436_v24 = vpop.f32.mrb[30].mxu0  ;;  %v1484_v25 = vpop.f32.mrb[30].mxu1 }
 0x1ea   : > { %1027 = vst [vmem:[%s1961_s22 + $0xf8] sm:$0xff] %v1436_v24  ;;  %1059 = vst [vmem:[%s1961_s22 + $0x1f8] sm:$0xff] %v1484_v25  ;;  %v827_v27 = vpop.f32.mrb[31].mxu0  ;;  %v987_v28 = vpop.f32.mrb[31].mxu1 }
 0x1eb   : > { %1026 = vst [vmem:[%s1961_s22 + $0xf0] sm:$0xff] %v827_v27  ;;  %1058 = vst [vmem:[%s1961_s22 + $0x1f0] sm:$0xff] %v987_v28 }
 0x1ec   : > { %1591 = shalt.err (!%p1588_p3)
}
 0x1ed   : > { %s1592_s4 = scalar_lea.hbm %s2028_s27, 8192  ;;  %s1596_s7 = scalar_lea.hbm %s2081_s2, 32768 }
 0x1ee   : > { %p1593_p4 = scmp.ne.s32.totalorder %s2028_s27, %s1592_s4  ;;  %p1597_p9 = scmp.lt.u32.totalorder %s2028_s27, %s2081_s2 }
 0x1ef   : > { %p1598_p10 = scmp.lt.u32.totalorder %s1596_s7, %s1592_s4  ;;  %p1600_p12 = scmp.lt.u32.totalorder %s1592_s4, %s2028_s27 }
 0x1f0   : > { %p1594_p7 = pnand %p1593_p4, %p1700_p5 }
 0x1f1   : > { %p1599_p11 = por %p1598_p10, %p1597_p9 }
 0x1f2   : > { %p1595_p8 = pneg %p1594_p7 }
 0x1f3   : > { %p1601_p13 = por %p1600_p12, %p1599_p11 }
 0x1f5   : > { %p1602_p0 = pnand %p1601_p13, %p1595_p8 }
 0x1f7   : > { %1605 = shalt.err (!%p1602_p0)
}
 0x1f8   : > { %s1645_s17 = smov 128   ;;  %s1646_s14 = smov 8  }
 0x1f9   : > { %1533 = dma.vmem_to_hbm [thread:$0]  (%p1700_p5), %s2030_s24, 8192, %s2028_s27, %s2038_s13, %s1645_s17, %s1645_s17, %s1646_s14  }
 0x1fa PF: > { %p1539_p1 = scmp.ge.s32.totalorder %s1640_s12, 2  ;;  %s1089_s21 = sand.u32 1, %s1628_s9  }
 0x1fb   : > { %s1090_s22 = scalar_lea.sflag [#allocation3], %s1089_s21 }
 0x1fc   : > { %p1536_p2 = pnand %p1539_p1, %p1704_p6 }
 0x1fe   : > { %1623 = dma.done.wait (!%p1536_p2), %s1090_s22, 8192  }
 0x1ff   : > { %1625 = vsyncadd (!%p1536_p2), %s1090_s22, 4294959104  ;;  %p12_p3 = scmp.ge.s32.totalorder %s1687_s15, 6   ;;  %s2084_s9 = smov %s1632_s10 }
 0x200   : > { %s2085_s10 = smov %s1636_s11  ;;  %s2086_s11 = smov %s1698_s18 }
 0x201   : > { %s2087_s12 = smov %s1687_s15  ;;  %14 = sbr.rel (!%p12_p3) target bundleno = 3 (0x3), region = 63 }
 0x208   :  { %1095 = vsyncpa [#allocation3], 1 }
 0x209   :  { %1097 = vsyncpa [#allocation3 + $0x1], 1 }

</bundles_post_ra>
